<compile_context>
chip_gen: v7x
topology: tpu7x:2x2x1
jax: 0.10.0
libtpu: 0.0.40
codegen_flags: <defaults>
</compile_context>

<pallas_src>
import functools

import jax
import jax.numpy as jnp
from jax import lax
from jax.experimental import pallas as pl
from jax.experimental.pallas import tpu as pltpu

UNK_TOKEN_ID = 0   # LlamaTokenizer unk_token_id ('<unk>' marks item slots)
NSEM = 64          # row-gather DMAs kept in flight per tile
CHUNK = 16         # rows retired / unpacked / stored per step


def _round_up(x, m):
    return (x + m - 1) // m * m


# --------------------------------------------------------------------------
# One-time (model-load) packing of the frozen embedding table.
# --------------------------------------------------------------------------
def _pack_bf16_halves(x_bf16):
    """[R, H] bf16 -> [R, H//2] uint32; word c packs bf16 columns (c, c + H//2)."""
    _, h = x_bf16.shape
    h2 = h // 2
    lo = lax.bitcast_convert_type(x_bf16[:, :h2], jnp.uint16).astype(jnp.uint32)
    hi = lax.bitcast_convert_type(x_bf16[:, h2:], jnp.uint16).astype(jnp.uint32)
    return lo | (hi << 16)


def prepare_gather_source(emb_table, max_item_rows):
    """Build the combined gather source once at model load.

    Returns (gather_src, items_cap):
      gather_src : [items_cap + vocab, hidden//2] uint32.  Rows [0, items_cap)
                   are reserved for per-call item embeddings (filled by
                   assemble_input_emb); rows [items_cap, ...) are the packed
                   frozen embedding table.
      items_cap  : row offset of the table inside gather_src.
    """
    vocab, hidden = emb_table.shape
    assert hidden % 256 == 0, "hidden must be a multiple of 256 (lane-dense halves)"
    items_cap = _round_up(max(int(max_item_rows), 1), 8)
    table_packed = _pack_bf16_halves(emb_table.astype(jnp.bfloat16))
    gather_src = jnp.zeros((items_cap + vocab, hidden // 2), jnp.uint32)
    gather_src = gather_src.at[items_cap:].set(table_packed)
    return gather_src, items_cap


# --------------------------------------------------------------------------
# Kernel 1: project item embeddings (f32 Linear), round to bf16, pack, and
# write in place into the reserved item region of the gather source.
# --------------------------------------------------------------------------
def _proj_pack_kernel(enc_ref, w_ref, b_ref, src_hbm_ref, out_hbm_ref,
                      item_vmem, sem):
    del src_hbm_ref  # aliased to out_hbm_ref; only the item rows are rewritten
    # nn.Linear in f32 (matches the PyTorch module); round the *result* to bf16.
    acc = jnp.dot(enc_ref[...], w_ref[...], preferred_element_type=jnp.float32)
    acc = acc + b_ref[...]
    bf = acc.astype(jnp.bfloat16)                    # .to(torch.bfloat16)
    h2 = item_vmem.shape[1]
    # word c packs bf16 columns (c, c + hidden/2); bf16->f32 widening appends
    # 16 zero bits, so the f32 bit pattern already has the bf16 bits on top.
    lo = pltpu.bitcast(bf[:, :h2].astype(jnp.float32), jnp.uint32) >> 16
    hi = pltpu.bitcast(bf[:, h2:].astype(jnp.float32), jnp.uint32)
    item_vmem[...] = lo | hi
    n_pad = item_vmem.shape[0]
    cp = pltpu.make_async_copy(item_vmem, out_hbm_ref.at[pl.ds(0, n_pad)],
                               sem.at[0])
    cp.start()
    cp.wait()


def _project_pack_items(enc_pad, proj_w, proj_b, gather_src):
    n_pad, input_dim = enc_pad.shape
    hidden = proj_w.shape[1]
    h2 = hidden // 2
    rows_total = gather_src.shape[0]
    assert gather_src.shape[1] == h2 and gather_src.dtype == jnp.uint32

    # Rough VMEM footprint: W (x2 buffers) + enc + f32 acc + packed items + margin.
    vmem_limit = int(2 * input_dim * hidden * 4
                     + 2 * n_pad * (input_dim + hidden + h2) * 4
                     + (8 << 20))

    return pl.pallas_call(
        _proj_pack_kernel,
        out_shape=jax.ShapeDtypeStruct((rows_total, h2), jnp.uint32),
        grid=(1,),
        in_specs=[
            pl.BlockSpec((n_pad, input_dim), lambda i: (0, 0)),
            pl.BlockSpec((input_dim, hidden), lambda i: (0, 0)),
            pl.BlockSpec((1, hidden), lambda i: (0, 0)),
            pl.BlockSpec(memory_space=pl.ANY),      # gather_src (aliased, HBM)
        ],
        out_specs=pl.BlockSpec(memory_space=pl.ANY),
        scratch_shapes=[
            pltpu.VMEM((n_pad, h2), jnp.uint32),
            pltpu.SemaphoreType.DMA((1,)),
        ],
        input_output_aliases={3: 0},   # update item rows in place; table untouched
        compiler_params=pltpu.CompilerParams(
            dimension_semantics=("arbitrary",),
            vmem_limit_bytes=vmem_limit),
    )(enc_pad,
      proj_w.astype(jnp.float32),
      proj_b.reshape(1, hidden).astype(jnp.float32),
      gather_src)


# --------------------------------------------------------------------------
# Kernel 2: tiled gather / assembly of the input embeddings.
# --------------------------------------------------------------------------
def _assemble_kernel(src_ref, gsrc_ref, o_ref, buf_ref, sems, *, chunk, nsem):
    """Gather one (TM, hidden) tile of input embeddings.

    src_ref  : SMEM scalar-prefetch, [t_pad] int32, source row per token
    gsrc_ref : HBM [items_cap + vocab, hidden//2] uint32 (packed bf16 pairs)
    o_ref    : VMEM output block, (TM, hidden)
    buf_ref  : VMEM scratch, (TM, hidden//2) uint32
    sems     : DMA semaphores, (nsem,)
    """
    tm = o_ref.shape[0]
    h2 = buf_ref.shape[1]
    n_chunks = tm // chunk
    depth = min(nsem // chunk, n_chunks)      # chunks kept in flight
    base = pl.program_id(0) * tm

    def issue(row, src):
        pltpu.make_async_copy(gsrc_ref.at[src], buf_ref.at[row],
                              sems.at[row % nsem]).start()

    def wait(row):
        # Same byte count as the issuing copy (one packed row, h2 * 4 bytes)
        # on the same semaphore slot.
        pltpu.make_async_copy(gsrc_ref.at[0], buf_ref.at[row],
                              sems.at[row % nsem]).wait()

    def unpack(row0):
        # word c packs bf16 columns (c, c + hidden/2); a bf16 value's f32 bit
        # pattern is its bf16 bits shifted left by 16.
        words = buf_ref[pl.ds(row0, chunk), :]
        lo = pltpu.bitcast(words << 16, jnp.float32)
        hi = pltpu.bitcast(words & jnp.uint32(0xFFFF0000), jnp.float32)
        o_ref[pl.ds(row0, chunk), :h2] = lo.astype(o_ref.dtype)
        o_ref[pl.ds(row0, chunk), h2:] = hi.astype(o_ref.dtype)

    # -- prologue: put `depth` chunks (up to nsem rows) in flight -------------
    for r in range(depth * chunk):                       # static unroll
        issue(r, src_ref[base + r])

    # -- steady state: retire chunk k, refill with chunk k+depth, unpack k ----
    def steady(k, carry):
        row0 = pl.multiple_of(k * chunk, chunk)
        nxt0 = row0 + depth * chunk
        # Read the next chunk's source rows before any .wait() (keeps SMEM
        # store->load forwarding intact).
        nxt_src = [src_ref[base + nxt0 + j] for j in range(chunk)]
        for j in range(chunk):                           # static unroll
            wait(row0 + j)
            issue(nxt0 + j, nxt_src[j])
        unpack(row0)
        return carry

    lax.fori_loop(0, n_chunks - depth, steady, 0)

    # -- drain: last `depth` chunks --------------------------------------------
    for c in range(n_chunks - depth, n_chunks):          # static unroll
        row0 = c * chunk
        for j in range(chunk):
            wait(row0 + j)
        unpack(row0)


# --------------------------------------------------------------------------
# Wrapper
# --------------------------------------------------------------------------
def assemble_input_emb(input_ids, encoded_emb, gather_src, items_cap,
                       proj_w, proj_b, *, tile_m=512, out_dtype=jnp.float32):
    """Fused soft-prompt input-embedding assembly (== module.get_input_emb).

    input_ids   : [B, S] int32 token ids (<unk> == 0 marks item slots)
    encoded_emb : [B, n_items_per_row, input_dim]; total rows == #<unk> tokens
    gather_src, items_cap : from prepare_gather_source (built once at load)
    proj_w      : [input_dim, hidden] (embedding_proj.weight.T)
    proj_b      : [hidden]            (embedding_proj.bias)
    returns     : (x_emb [B, S, hidden] float32 (values rounded through bf16),
                   updated gather_src -- thread/donate it on the next call)
    """
    B, S = input_ids.shape
    input_dim, hidden = proj_w.shape
    assert hidden % 256 == 0, "hidden must be a multiple of 256"
    h2 = hidden // 2
    assert gather_src.shape[1] == h2 and gather_src.dtype == jnp.uint32
    T = B * S

    ids_flat = input_ids.reshape(T).astype(jnp.int32)
    is_unk = ids_flat == UNK_TOKEN_ID
    # Row-major slot index into the flattened item_embedding list (matches the
    # torch.nonzero ordering + sequential scatter of the PyTorch module).
    slot = jnp.maximum(jnp.cumsum(is_unk.astype(jnp.int32)) - 1, 0)
    # Branchless gather-source row: item region first, table after it.
    src_row = jnp.where(is_unk, slot, items_cap + ids_flat)

    # ---- Kernel 1: project + bf16-round + pack the item rows in place. ----
    enc_flat = encoded_emb.reshape(-1, input_dim).astype(jnp.float32)
    n_items = enc_flat.shape[0]
    n_pad = _round_up(max(n_items, 1), 8)
    assert n_pad <= items_cap, "prepare_gather_source max_item_rows too small"
    enc_pad = jnp.zeros((n_pad, input_dim), jnp.float32).at[:n_items].set(enc_flat)
    gather_src = _project_pack_items(enc_pad, proj_w, proj_b, gather_src)

    # ---- Kernel 2: tiled gather / assembly. ----
    tm = tile_m if T >= tile_m else _round_up(T, 8)
    t_pad = _round_up(T, tm)
    chunk = CHUNK if tm % CHUNK == 0 else 8
    nsem = max(min(NSEM, tm), chunk)
    # Padded tail rows gather item row 0 (valid, sliced off below).
    src_pad = jnp.zeros((t_pad,), jnp.int32).at[:T].set(src_row)

    out_bytes = tm * hidden * jnp.dtype(out_dtype).itemsize
    buf_bytes = tm * h2 * 4
    vmem_limit = int(2 * out_bytes + buf_bytes + (8 << 20))

    kernel = functools.partial(_assemble_kernel, chunk=chunk, nsem=nsem)
    out = pl.pallas_call(
        kernel,
        out_shape=jax.ShapeDtypeStruct((t_pad, hidden), out_dtype),
        grid_spec=pltpu.PrefetchScalarGridSpec(
            num_scalar_prefetch=1,
            grid=(t_pad // tm,),
            in_specs=[pl.BlockSpec(memory_space=pl.ANY)],   # packed gather source
            out_specs=pl.BlockSpec((tm, hidden), lambda i, src: (i, 0)),
            scratch_shapes=[
                pltpu.VMEM((tm, h2), jnp.uint32),
                pltpu.SemaphoreType.DMA((nsem,)),
            ],
        ),
        compiler_params=pltpu.CompilerParams(
            dimension_semantics=("parallel",),
            vmem_limit_bytes=vmem_limit),
    )(src_pad, gather_src)

    return out[:T].reshape(B, S, hidden), gather_src


# --------------------------------------------------------------------------
# Pure-JAX reference (mirrors the PyTorch module's math).
# --------------------------------------------------------------------------
def _reference(input_ids, encoded_emb, emb_table, proj_w, proj_b):
    B, S = input_ids.shape
    input_dim, hidden = proj_w.shape
    ids_flat = input_ids.reshape(-1)
    enc_flat = encoded_emb.reshape(-1, input_dim).astype(jnp.float32)
    item = (enc_flat @ proj_w.astype(jnp.float32)
            + proj_b.astype(jnp.float32)[None, :]).astype(jnp.bfloat16)
    tok = emb_table[ids_flat].astype(jnp.bfloat16)
    is_unk = ids_flat == UNK_TOKEN_ID
    slot = jnp.maximum(jnp.cumsum(is_unk.astype(jnp.int32)) - 1, 0)
    out = jnp.where(is_unk[:, None], item[slot], tok).astype(jnp.float32)
    return out.reshape(B, S, hidden)


if __name__ == "__main__":
    # Small shapes consistent with the module: hidden=256 stands in for 4096.
    B, S = 2, 8
    INPUT_DIM = 32
    HIDDEN = 256
    VOCAB = 64
    N_UNK_PER_ROW = 2

    key = jax.random.PRNGKey(0)
    k_tab, k_enc, k_w, k_b, k_ids = jax.random.split(key, 5)

    emb_table = jax.random.normal(k_tab, (VOCAB, HIDDEN), dtype=jnp.float32) * 0.02
    proj_w = jax.random.normal(k_w, (INPUT_DIM, HIDDEN), dtype=jnp.float32) * 0.05
    proj_b = jax.random.normal(k_b, (HIDDEN,), dtype=jnp.float32) * 0.01

    # Random non-unk ids with exactly N_UNK_PER_ROW <unk> (=0) slots per row.
    input_ids = jax.random.randint(k_ids, (B, S), 1, VOCAB, dtype=jnp.int32)
    input_ids = input_ids.at[:, 1].set(UNK_TOKEN_ID).at[:, 4].set(UNK_TOKEN_ID)

    encoded_emb = jax.random.normal(k_enc, (B, N_UNK_PER_ROW, INPUT_DIM),
                                    dtype=jnp.float32)

    # One-time (model-load) packing of the frozen embedding table.
    gather_src, items_cap = prepare_gather_source(
        emb_table, max_item_rows=B * N_UNK_PER_ROW)

    out, gather_src = assemble_input_emb(
        input_ids, encoded_emb, gather_src, items_cap, proj_w, proj_b)
    out = jax.block_until_ready(out)

    ref = _reference(input_ids, encoded_emb, emb_table, proj_w, proj_b)
    assert out.shape == (B, S, HIDDEN) and out.dtype == jnp.float32
    assert jnp.allclose(out, ref, atol=2e-2, rtol=2e-2), "mismatch vs reference"

    print("KERNEL_OK")
</pallas_src>

<mosaic_0001>
module attributes {stable_mosaic.version = 11 : i64} {
  func.func @_proj_pack_kernel(%arg0: i32, %arg1: memref<8x32xf32, #tpu.memory_space<vmem>>, %arg2: memref<32x256xf32, #tpu.memory_space<vmem>>, %arg3: memref<1x256xf32, #tpu.memory_space<vmem>>, %arg4: memref<72x128xi32, #tpu.memory_space<any>>, %arg5: memref<72x128xi32, #tpu.memory_space<any>>, %arg6: memref<8x128xi32, #tpu.memory_space<vmem>>, %arg7: memref<1x!tpu.dma_semaphore, #tpu.memory_space<semaphore_mem>>) attributes {dimension_semantics = [#tpu.dimension_semantics<arbitrary>], iteration_bounds = array<i64: 1>, scalar_prefetch = 0 : i64, scratch_operands = 2 : i64, tpu.core_type = #tpu.core_type<tc>, window_params = [{pipeline_mode = #tpu.pipeline_mode<synchronous>, transform_indices = @transform_0, window_bounds = array<i64: 8, 32>}, {pipeline_mode = #tpu.pipeline_mode<synchronous>, transform_indices = @transform_1, window_bounds = array<i64: 32, 256>}, {pipeline_mode = #tpu.pipeline_mode<synchronous>, transform_indices = @transform_2, window_bounds = array<i64: 1, 256>}, {}, {}]} {
    %c0 = arith.constant 0 : index
    %c0_0 = arith.constant 0 : index
    %0 = vector.load %arg1[%c0, %c0_0] : memref<8x32xf32, #tpu.memory_space<vmem>>, vector<8x32xf32>
    %c0_1 = arith.constant 0 : index
    %c0_2 = arith.constant 0 : index
    %1 = vector.load %arg2[%c0_1, %c0_2] : memref<32x256xf32, #tpu.memory_space<vmem>>, vector<32x256xf32>
    %cst = arith.constant dense<0.000000e+00> : vector<8x256xf32>
    %2 = tpu.matmul %0, %1, %cst {dimension_numbers = #tpu.dot_dimension_numbers<[1], [0], [0], [1], [0, 0, 1, 1], [], []>} : vector<8x32xf32>, vector<32x256xf32>, vector<8x256xf32> -> vector<8x256xf32>
    %c0_3 = arith.constant 0 : index
    %c0_4 = arith.constant 0 : index
    %3 = vector.load %arg3[%c0_3, %c0_4] : memref<1x256xf32, #tpu.memory_space<vmem>>, vector<1x256xf32>
    %4 = vector.broadcast %3 : vector<1x256xf32> to vector<8x256xf32>
    %5 = arith.addf %2, %4 : vector<8x256xf32>
    %6 = arith.truncf %5 : vector<8x256xf32> to vector<8x256xbf16>
    %7 = vector.extract_strided_slice %6 {offsets = [0, 0], sizes = [8, 128], strides = [1, 1]} : vector<8x256xbf16> to vector<8x128xbf16>
    %8 = arith.extf %7 : vector<8x128xbf16> to vector<8x128xf32>
    %9 = tpu.bitcast %8 : vector<8x128xf32> -> vector<8x128xi32>
    %c16_i32 = arith.constant 16 : i32
    %10 = vector.broadcast %c16_i32 : i32 to vector<8x128xi32>
    %11 = arith.shrui %9, %10 : vector<8x128xi32>
    %12 = vector.extract_strided_slice %6 {offsets = [0, 128], sizes = [8, 128], strides = [1, 1]} : vector<8x256xbf16> to vector<8x128xbf16>
    %13 = arith.extf %12 : vector<8x128xbf16> to vector<8x128xf32>
    %14 = tpu.bitcast %13 : vector<8x128xf32> -> vector<8x128xi32>
    %15 = arith.ori %11, %14 : vector<8x128xi32>
    %c0_5 = arith.constant 0 : index
    %c0_6 = arith.constant 0 : index
    %16 = vector.load %arg6[%c0_5, %c0_6] : memref<8x128xi32, #tpu.memory_space<vmem>>, vector<8x128xi32>
    tpu.vector_store %arg6[%c0_5, %c0_6], %15 {strides = array<i32>} : memref<8x128xi32, #tpu.memory_space<vmem>>, vector<8x128xi32>,
    %c0_i32 = arith.constant 0 : i32
    %c0_i32_7 = arith.constant 0 : i32
    %c0_i32_8 = arith.constant 0 : i32
    %17 = tpu.memref_slice %arg5[%c0_i32_7, %c0_i32_8] : memref<72x128xi32, #tpu.memory_space<any>> -> memref<8x128xi32, #tpu.memory_space<any>>
    %18 = tpu.memref_slice %arg7[%c0_i32] : memref<1x!tpu.dma_semaphore, #tpu.memory_space<semaphore_mem>> -> memref<1x!tpu.dma_semaphore, #tpu.memory_space<semaphore_mem>>
    %19 = tpu.memref_squeeze %18 : memref<1x!tpu.dma_semaphore, #tpu.memory_space<semaphore_mem>> -> memref<!tpu.dma_semaphore, #tpu.memory_space<semaphore_mem>>
    tpu.enqueue_dma source(%arg6 : memref<8x128xi32, #tpu.memory_space<vmem>>) target(%17 : memref<8x128xi32, #tpu.memory_space<any>>) target_semaphore(%19 : memref<!tpu.dma_semaphore, #tpu.memory_space<semaphore_mem>>)
    %c0_i32_9 = arith.constant 0 : i32
    %c0_i32_10 = arith.constant 0 : i32
    %c0_i32_11 = arith.constant 0 : i32
    %20 = tpu.memref_slice %arg5[%c0_i32_10, %c0_i32_11] : memref<72x128xi32, #tpu.memory_space<any>> -> memref<8x128xi32, #tpu.memory_space<any>>
    %21 = tpu.memref_slice %arg7[%c0_i32_9] : memref<1x!tpu.dma_semaphore, #tpu.memory_space<semaphore_mem>> -> memref<1x!tpu.dma_semaphore, #tpu.memory_space<semaphore_mem>>
    %22 = tpu.memref_squeeze %21 : memref<1x!tpu.dma_semaphore, #tpu.memory_space<semaphore_mem>> -> memref<!tpu.dma_semaphore, #tpu.memory_space<semaphore_mem>>
    tpu.wait_dma2 semaphore(%22 : memref<!tpu.dma_semaphore, #tpu.memory_space<semaphore_mem>>) src(%arg6 : memref<8x128xi32, #tpu.memory_space<vmem>>) dst(%20 : memref<8x128xi32, #tpu.memory_space<any>>)
    return
  }
  func.func @transform_0(%arg0: i32) -> (i32, i32) {
    %c0_i32 = arith.constant 0 : i32
    %c0_i32_0 = arith.constant 0 : i32
    %c0_i32_1 = arith.constant 0 : i32
    return %c0_i32, %c0_i32_0 : i32, i32
  }
  func.func @transform_1(%arg0: i32) -> (i32, i32) {
    %c0_i32 = arith.constant 0 : i32
    %c0_i32_0 = arith.constant 0 : i32
    %c0_i32_1 = arith.constant 0 : i32
    return %c0_i32, %c0_i32_0 : i32, i32
  }
  func.func @transform_2(%arg0: i32) -> (i32, i32) {
    %c0_i32 = arith.constant 0 : i32
    %c0_i32_0 = arith.constant 0 : i32
    %c0_i32_1 = arith.constant 0 : i32
    return %c0_i32, %c0_i32_0 : i32, i32
  }
}

</mosaic_0001>

<bundles_post_ra>
// kernel: tpu_custom_call.1
= control target key start
LH: loop header
LB: loop body
LE: loop exit
PB: predicated region body
PF: predicated region fallthrough
CT: control target
= control target key end

     0   :  { %v176_v3 = vmov 0.0   ;;  %vm36_vm0 = vcmask 261120   ;;  %v26_v14 = vlaneseq  ;;  %s248_s1 = inlined_call_operand.vmem [shape: f32[32,256], index: 1, kind: input, shape index: {}]   ;;  %s249_s3 = inlined_call_operand.hbm [shape: u32[72,128], index: 3, kind: input, shape index: {}, may-alias: {3,4}]   ;;  %s250_s0 = inlined_call_operand.vmem [shape: f32[8,32], index: 0, kind: input, shape index: {}]   ;;  %s251_s2 = inlined_call_operand.vmem [shape: f32[1,256], index: 2, kind: input, shape index: {}]   ;;  %s252_s4 = inlined_call_operand.hbm [shape: u32[72,128], index: 4, kind: output, shape index: {}, may-alias: {3,4}]  }
   0x1   :  { %v17_v0 = vld [vmem:[%s248_s1 + $0x8] sm:$0xff]  ;;  %v19_v1 = vld [vmem:[%s248_s1 + $0x18] sm:$0xff]  ;;  %v16_v2 = vld [vmem:[%s248_s1] sm:$0xff]  ;;  %104 = vmatprep.mubr.f32.mxu0 %v176_v3 }
   0x2   :  { %v142_v4 = vpack.c.bf16 %v19_v1, %v17_v0  ;;  %v18_v5 = vld [vmem:[%s248_s1 + $0x10] sm:$0xff]  ;;  %v21_v6 = vld [vmem:[%s248_s1 + $0x28] sm:$0xff]  ;;  %v23_v7 = vld [vmem:[%s248_s1 + $0x38] sm:$0xff]  ;;  %v27_v15 = vshrl.u32 %v26_v14, 7 }
   0x3   :  { %v144_v8 = vpack.c.bf16 %v18_v5, %v16_v2  ;;  %v146_v9 = vpack.c.bf16 %v23_v7, %v21_v6  ;;  %v20_v10 = vld [vmem:[%s248_s1 + $0x20] sm:$0xff]  ;;  %v22_v11 = vld [vmem:[%s248_s1 + $0x30] sm:$0xff] }
   0x4   :  { %143 = vmatprep.subr.bf16.mxu0 %v142_v4  ;;  %v148_v12 = vpack.c.bf16 %v22_v11, %v20_v10  ;;  %v15_v13 = vld [vmem:[%s250_s0] sm:$0xff]  ;;  %v28_v16 = vsub.s32 0, %v27_v15  ;;  %v32_v18 = vsub.s32 1, %v27_v15  ;;  %s177_s0 = smov [#allocation2]  }
   0x5   :  { %145 = vmatpush1.bf16.msra.mxu0 %v144_v8  ;;  %v24_v17 = vld [vmem:[%s251_s2] sm:$0x3]  ;;  %s127_s1 = sshll.u32 %s177_s0, 4  ;;  %s128_s1 = int_to_ptr.vmem [resolvable:$true] %s127_s1 }
   0x6   :  { %147 = vmatprep.subr.bf16.mxu0 %v146_v9  ;;  %v29_v19 = vrot.slane %v24_v17, %v28_v16  ;;  %v33_v20 = vrot.slane %v24_v17, %v32_v18  ;;  %s152_s8 = scalar_lea.vmem %s128_s1, 128  ;;  %p157_p1 = scmp.lt.s32.totalorder %s128_s1, %s128_s1 }
   0x7   :  { %p153_p0 = scmp.ne.s32.totalorder %s128_s1, %s152_s8  ;;  %p158_p2 = scmp.lt.s32.totalorder %s152_s8, %s152_s8 }
   0x9   :  { %149 = vmatpush1.bf16.msra.mxu0 %v148_v12  ;;  %p159_p3 = por %p158_p2, %p157_p1 }
   0xb   :  { %p160_p4 = pnand %p159_p3, %p153_p0 }
   0xc   :  { %140 = vmatmul.mubr.msk.f32.vlgmr.msra.gmra.mrb[0].mxu0 %vm36_vm0, %v15_v13 }
  0xdf   :  { %v106_v21 = vpop.f32.mrb[0].mxu0 }
  0xe0   :  { %v107_v22 = vadd.f32 %v106_v21, %v29_v19  ;;  %v108_v23 = vpop.f32.mrb[1].mxu0 }
  0xe1   :  { %v109_v24 = vadd.f32 %v108_v23, %v33_v20 }
  0xe2   :  { %v111_v25 = vpack.c.bf16 %v107_v22, %v107_v22 }
  0xe3   :  { %v112_v26 = vpack.c.bf16 %v109_v24, %v109_v24 }
  0xe4   :  { %v113_v27 = vunpack.c.l.bf16 %v111_v25 }
  0xe5   :  { %v116_v28 = vunpack.c.l.bf16 %v112_v26 }
  0xe6   :  { %v115_v29 = vshrl.u32 %v113_v27, 16 }
  0xe8   :  { %v118_v30 = vor.u32 %v116_v28, %v115_v29 }
  0xea   :  { %119 = vst [vmem:[#allocation2] sm:$0xff] %v118_v30 }
  0xeb   :  { %163 = shalt.err (!%p160_p4)  }
  0xec   :  { %s164_s10 = scalar_lea.hbm %s252_s4, 128  ;;  %s166_s15 = scalar_lea.hbm %s252_s4, 1152 }
  0xed   :  { %p165_p5 = scmp.ne.s32.totalorder %s252_s4, %s164_s10  ;;  %p167_p6 = scmp.lt.u32.totalorder %s166_s15, %s164_s10 }
  0xee   :  { %p168_p7 = scmp.lt.u32.totalorder %s164_s10, %s252_s4 }
  0xf0   :  { %p169_p8 = por %p168_p7, %p167_p6 }
  0xf2   :  { %p170_p9 = pnand %p169_p8, %p165_p5 }
  0xf4   :  { %173 = shalt.err (!%p170_p9)  }
  0xf5   :  { %130 = dma.vmem_to_hbm [thread:$0]  %s128_s1, 128, %s252_s4, [#allocation3] }
  0xf6   :  { %174 = dma.done.wait [#allocation3], 128 }
  0xf7   :  { %175 = vsyncadd [#allocation3], 4294967168 }
  0xf8   :  { %134 = vsyncmov [#allocation3] }
  0xfb   :  { %s135_s20 = vpop.sfrf %134 }
  0xfc   :  { %p141_p10 = scmp.ne.s32.totalorder %s135_s20, 0 }
  0xfe   :  { %139 = shalt.err (%p141_p10)  }

</bundles_post_ra>
